<compile_context>
chip_gen: v7x
topology: tpu7x:2x2x1
jax: 0.10.0
libtpu: 0.0.40
codegen_flags: <defaults>
</compile_context>

<pallas_src>
import math
import numpy as np
import jax
import jax.numpy as jnp
from jax.experimental import pallas as pl
from jax.experimental.pallas import tpu as pltpu

# ---------------- model hyper-parameters (small, consistent with module) ----
DIM = 32          # hidden size
HEADS = 4         # num_heads
HEAD = DIM // HEADS
SEQ = 8           # seq_len
CHUNK = 4         # chunk_size (controls the "uncausal" D mask)
BATCH = 2
BS = BATCH * SEQ  # flattened rows
GAMMA_DIVIDER = 8
SCALE_BASE = 512
EPS = 1e-5

# ---- weight-slab column offsets (lane axis) --------------------------------
WA_LO, WA_HI = 0, 8 * DIM            # fused [Q|Qrot|K|Krot|V|G|pad] projection
WO_LO, WO_HI = 8 * DIM, 10 * DIM     # W_O2^T (GroupNorm affine folded), 64 cols
MG_LO, MG_HI = 10 * DIM, 11 * DIM    # block-diag group-mean matrix, 32 cols
WCOLS = 12 * DIM                     # 384

# ---- constants-slab layout --------------------------------------------------
SC_COLS = 4 * DIM                                # packed [cos_q|sin_q|cos_k|sin_k]
DA_LO, DA_HI = 4 * DIM, 4 * DIM + HEADS * BS     # packed per-head D (block-diag), 64 cols
CCOLS = 8 * DIM                                  # 256 (bias row matches proj width)
CROWS = 24                                       # rows 0:16 per-position, row 16 = b_all


# ---------------- host-side constants & parameter packing -------------------
def xpos_sin_cos(length, head_dim, downscale):
    """(sin, cos) already duplicate-interleaved and scaled, shape (L, head_dim)."""
    s = (np.arange(0, head_dim, 2) + 0.4 * head_dim) / (1.4 * head_dim)
    power = np.arange(0, length) / SCALE_BASE
    scale = s[None, :] ** power[:, None]                          # (L, hd/2)
    dim = scale.shape[1]
    inv_freq = 1.0 / 10000 ** (np.arange(0, dim) / dim)
    sinusoid = np.arange(0, length, dtype=np.float64)[:, None] * inv_freq[None, :]
    sin, cos = np.sin(sinusoid), np.cos(sinusoid)
    if downscale:
        scale = 1.0 / scale
    sin2 = np.repeat(sin * scale, 2, axis=1)     # duplicate_interleave(sin * scale)
    cos2 = np.repeat(cos * scale, 2, axis=1)
    return sin2.astype(np.float32), cos2.astype(np.float32)


def make_rotated_weight(w):
    """w: (H, D, hd). Returns wr with (X @ wr) == rotate_every_two(X @ w)."""
    wp = np.asarray(w).reshape(HEADS, DIM, HEAD // 2, 2)
    wr = np.stack((-wp[..., 1], wp[..., 0]), axis=-1).reshape(HEADS, DIM, HEAD)
    return wr.astype(np.float32)


def make_D_parallel(gammas):
    """Uncausal D: D[h,i,j] = gamma_h^|i-j| for j < ((i//chunk)+1)*chunk else 0."""
    i_idx = np.arange(SEQ)[:, None]
    j_idx = np.arange(SEQ)[None, :]
    j_range = np.minimum(SEQ, (i_idx // CHUNK + 1) * CHUNK)
    mask = j_idx < j_range
    D = np.where(mask[None], gammas[:, None, None] ** np.abs(i_idx - j_idx)[None], 0.0)
    D = np.nan_to_num(D)
    return D.astype(np.float32)


def concat_heads(w):
    """(H, D, hd) -> (D, H*hd), head h occupying columns [h*hd, (h+1)*hd)."""
    return np.transpose(np.asarray(w), (1, 0, 2)).reshape(DIM, DIM)


def pack_params(W_Q, W_K, W_V, W_G, W_O, ln_w, ln_b, gn_w, gn_b, D_par):
    """Pack everything into two lane-dense slabs: weights (32,384), consts (24,256)."""
    W_Q, W_K, W_V = np.asarray(W_Q), np.asarray(W_K), np.asarray(W_V)
    W_G, W_O = np.asarray(W_G), np.asarray(W_O)
    ln_w, ln_b = np.asarray(ln_w), np.asarray(ln_b)
    gn_w, gn_b = np.asarray(gn_w), np.asarray(gn_b)

    W_Qr = make_rotated_weight(W_Q)           # fold rotate_every_two into weights
    W_Kr = make_rotated_weight(W_K)
    W_all = np.concatenate([concat_heads(W_Q), concat_heads(W_Qr),
                            concat_heads(W_K), concat_heads(W_Kr),
                            concat_heads(W_V), W_G], axis=1)           # (32, 192)

    weights = np.zeros((DIM, WCOLS), np.float32)
    weights[:, 0:6 * DIM] = ln_w[:, None] * W_all          # LayerNorm affine fold
    # GroupNorm affine fold: out = [gate*yn | gate] @ [gn_w*W_O ; gn_b*W_O]
    W_O2 = np.concatenate([gn_w[:, None] * W_O, gn_b[:, None] * W_O], axis=0)  # (64, 32)
    weights[:, WO_LO:WO_HI] = W_O2.T                       # stored transposed (32, 64)
    for h in range(HEADS):                                 # block-diag ones/HEAD matrix
        weights[h * HEAD:(h + 1) * HEAD,
                MG_LO + h * HEAD:MG_LO + (h + 1) * HEAD] = 1.0 / HEAD

    sin_q, cos_q = xpos_sin_cos(SEQ, HEAD, downscale=False)
    sin_k, cos_k = xpos_sin_cos(SEQ, HEAD, downscale=True)
    consts = np.zeros((CROWS, CCOLS), np.float32)
    consts[0:BS, 0 * DIM:1 * DIM] = np.tile(cos_q, (BATCH, HEADS))
    consts[0:BS, 1 * DIM:2 * DIM] = np.tile(sin_q, (BATCH, HEADS))
    consts[0:BS, 2 * DIM:3 * DIM] = np.tile(cos_k, (BATCH, HEADS))
    consts[0:BS, 3 * DIM:4 * DIM] = np.tile(sin_k, (BATCH, HEADS))
    # packed per-head D, block-diagonal over the flattened batch*seq axis
    for h in range(HEADS):
        for b in range(BATCH):
            consts[b * SEQ:(b + 1) * SEQ,
                   DA_LO + h * BS + b * SEQ:DA_LO + h * BS + (b + 1) * SEQ] = D_par[h]
    consts[BS, 0:6 * DIM] = ln_b @ W_all                   # LN bias folded into proj bias
    return jnp.asarray(weights), jnp.asarray(consts)


# ---------------- Pallas kernel ----------------------------------------------
def retention_block_kernel(x_ref, w_ref, c_ref, o_ref, kstk_ref, vstk_ref, a_ref):
    x = x_ref[...]                                           # (BS, DIM)

    # LayerNorm statistics only (affine folded into the weight slab).
    mu = jnp.mean(x, axis=-1, keepdims=True)
    var = jnp.mean((x - mu) ** 2, axis=-1, keepdims=True)
    xh = (x - mu) * jax.lax.rsqrt(var + EPS)

    # Fused projection [Q|Qrot|K|Krot|V|G|pad]: one 256-wide MXU pass,
    # LN bias rides on the epilogue as a broadcast add of the packed bias row.
    proj = jnp.dot(xh, w_ref[:, WA_LO:WA_HI],
                   preferred_element_type=jnp.float32) + c_ref[BS:BS + 1, :]

    # XPOS rotary: one full-lane multiply with packed [cos_q|sin_q|cos_k|sin_k],
    # then combine base + pre-rotated columns (rotate_every_two folded in weights).
    t = proj[:, 0:SC_COLS] * c_ref[0:BS, 0:SC_COLS]
    q = t[:, 0 * DIM:1 * DIM] + t[:, 1 * DIM:2 * DIM]
    k = t[:, 2 * DIM:3 * DIM] + t[:, 3 * DIM:4 * DIM]
    v = proj[:, 4 * DIM:5 * DIM]
    g = proj[:, 5 * DIM:6 * DIM]

    # Head-stacked, lane-masked K and V (masks from iota -> no extra DMA).
    lane = jax.lax.broadcasted_iota(jnp.int32, (1, DIM), 1)
    for h in range(HEADS):                                   # 4 static iterations
        m = ((lane >= h * HEAD) & (lane < (h + 1) * HEAD)).astype(jnp.float32)
        kstk_ref[h * BS:(h + 1) * BS, :] = k * m
        vstk_ref[h * BS:(h + 1) * BS, :] = v * m

    # Retention: ONE score matmul + packed block-diag D mask + ONE value matmul.
    dn = (((1,), (1,)), ((), ()))
    sc = jax.lax.dot_general(q, kstk_ref[...], dimension_numbers=dn,
                             preferred_element_type=jnp.float32)        # (BS, H*BS)
    sc = sc * c_ref[0:BS, DA_LO:DA_HI]
    y = jnp.dot(sc, vstk_ref[...], preferred_element_type=jnp.float32)  # (BS, DIM)

    # GroupNorm statistics via block-diag ones matmul (affine folded into W_O2).
    mgrp = w_ref[:, MG_LO:MG_HI]
    gmu = jnp.dot(y, mgrp, preferred_element_type=jnp.float32)
    yc = y - gmu
    gvar = jnp.dot(yc * yc, mgrp, preferred_element_type=jnp.float32)
    yn = yc * jax.lax.rsqrt(gvar + EPS)

    # swish gate, merged (BS,64)@(64,DIM) output projection, residual add.
    gate = g * jax.nn.sigmoid(g)
    a_ref[:, 0:DIM] = gate * yn
    a_ref[:, DIM:2 * DIM] = gate
    out = jax.lax.dot_general(a_ref[...], w_ref[:, WO_LO:WO_HI],
                              dimension_numbers=dn,
                              preferred_element_type=jnp.float32)
    o_ref[...] = x + out


@jax.jit
def retention_block(x, weights, consts):
    B, S, D = x.shape
    bs = B * S
    x2d = x.reshape(bs, D)

    def fs(shape):
        return pl.BlockSpec(shape, lambda i, _s=shape: (0,) * len(_s))

    out2d = pl.pallas_call(
        retention_block_kernel,
        out_shape=jax.ShapeDtypeStruct((bs, D), jnp.float32),
        grid_spec=pltpu.PrefetchScalarGridSpec(
            num_scalar_prefetch=0,
            grid=(1,),                                    # whole problem fits in one step
            in_specs=[fs((bs, D)), fs(weights.shape), fs(consts.shape)],
            out_specs=fs((bs, D)),
            scratch_shapes=[pltpu.VMEM((HEADS * bs, D), jnp.float32),   # K stack
                            pltpu.VMEM((HEADS * bs, D), jnp.float32),   # V stack
                            pltpu.VMEM((bs, 2 * D), jnp.float32)],      # [gate*yn|gate]
        ),
        input_output_aliases={0: 0},                      # output reuses the x slab
        compiler_params=pltpu.CompilerParams(dimension_semantics=("arbitrary",)),
    )(x2d, weights, consts)
    return out2d.reshape(B, S, D)


# ---------------- pure-JAX reference (mirrors PyTorch semantics) ------------
def rotate_every_two_jax(x):
    x1 = x[..., ::2]
    x2 = x[..., 1::2]
    return jnp.stack((-x2, x1), axis=-1).reshape(x.shape)


def reference(x, W_Q, W_K, W_V, W_G, W_O, D_par,
              ln_w, ln_b, gn_w, gn_b, sin_q, cos_q, sin_k, cos_k):
    B, S, D = x.shape
    mu = x.mean(-1, keepdims=True)
    var = ((x - mu) ** 2).mean(-1, keepdims=True)
    xn = (x - mu) / jnp.sqrt(var + EPS) * ln_w + ln_b

    Ys = []
    for h in range(HEADS):
        Q = xn @ W_Q[h]
        K = xn @ W_K[h]
        Q = Q * cos_q + rotate_every_two_jax(Q) * sin_q
        K = K * cos_k + rotate_every_two_jax(K) * sin_k
        V = xn @ W_V[h]
        ret = (Q @ jnp.swapaxes(K, -1, -2)) * D_par[h][None]
        Ys.append(ret @ V)
    Y = jnp.concatenate(Ys, axis=-1)                             # (B, S, DIM)

    Yg = Y.reshape(B * S, HEADS, HEAD)
    gmu = Yg.mean(-1, keepdims=True)
    gvar = ((Yg - gmu) ** 2).mean(-1, keepdims=True)
    Yn = (Yg - gmu) / jnp.sqrt(gvar + EPS)
    Yn = Yn * gn_w.reshape(1, HEADS, HEAD) + gn_b.reshape(1, HEADS, HEAD)
    Yn = Yn.reshape(B, S, DIM)

    gate = xn @ W_G
    gate = gate * jax.nn.sigmoid(gate)
    return x + (gate * Yn) @ W_O


# ---------------- main -------------------------------------------------------
if __name__ == "__main__":
    key = jax.random.PRNGKey(0)
    keys = jax.random.split(key, 10)

    x = jax.random.normal(keys[0], (BATCH, SEQ, DIM), jnp.float32)

    # deterministic synthetic parameters (shapes per the module __init__)
    W_Q = jax.random.normal(keys[1], (HEADS, DIM, HEAD), jnp.float32) / DIM
    W_K = jax.random.normal(keys[2], (HEADS, DIM, HEAD), jnp.float32) / DIM
    W_V = jax.random.normal(keys[3], (HEADS, DIM, HEAD), jnp.float32) / DIM
    W_G = jax.random.normal(keys[4], (DIM, DIM), jnp.float32) / DIM
    W_O = jax.random.normal(keys[5], (DIM, DIM), jnp.float32) / DIM
    # non-trivial LayerNorm / GroupNorm affines to exercise the weight folds
    ln_w = 1.0 + 0.1 * jax.random.normal(keys[6], (DIM,), jnp.float32)
    ln_b = 0.1 * jax.random.normal(keys[7], (DIM,), jnp.float32)
    gn_w = 1.0 + 0.1 * jax.random.normal(keys[8], (DIM,), jnp.float32)
    gn_b = 0.1 * jax.random.normal(keys[9], (DIM,), jnp.float32)

    # per-head decay gammas (MultiScaleRetention, joint_related=False)
    gammas = 1.0 - np.exp(np.linspace(math.log(1.0 / GAMMA_DIVIDER),
                                      math.log(1.0 / (GAMMA_DIVIDER * 16)), HEADS))
    D_par_np = make_D_parallel(gammas)

    weights, consts = pack_params(W_Q, W_K, W_V, W_G, W_O,
                                  ln_w, ln_b, gn_w, gn_b, D_par_np)

    out = jax.block_until_ready(retention_block(x, weights, consts))

    sin_q_np, cos_q_np = xpos_sin_cos(SEQ, HEAD, downscale=False)
    sin_k_np, cos_k_np = xpos_sin_cos(SEQ, HEAD, downscale=True)
    ref = reference(x, W_Q, W_K, W_V, W_G, W_O, jnp.asarray(D_par_np),
                    ln_w, ln_b, gn_w, gn_b,
                    jnp.asarray(sin_q_np), jnp.asarray(cos_q_np),
                    jnp.asarray(sin_k_np), jnp.asarray(cos_k_np))
    ref = jax.block_until_ready(ref)

    np.testing.assert_allclose(np.asarray(out), np.asarray(ref), rtol=1e-3, atol=1e-3)
    print("KERNEL_OK")
</pallas_src>

<mosaic_0001>
module attributes {stable_mosaic.version = 11 : i64} {
  func.func @retention_block_kernel(%arg0: i32, %arg1: memref<16x32xf32, #tpu.memory_space<vmem>>, %arg2: memref<32x384xf32, #tpu.memory_space<vmem>>, %arg3: memref<24x256xf32, #tpu.memory_space<vmem>>, %arg4: memref<16x32xf32, #tpu.memory_space<vmem>>, %arg5: memref<64x32xf32, #tpu.memory_space<vmem>>, %arg6: memref<64x32xf32, #tpu.memory_space<vmem>>, %arg7: memref<16x64xf32, #tpu.memory_space<vmem>>) attributes {dimension_semantics = [#tpu.dimension_semantics<arbitrary>], iteration_bounds = array<i64: 1>, scalar_prefetch = 0 : i64, scratch_operands = 3 : i64, tpu.core_type = #tpu.core_type<tc>, window_params = [{pipeline_mode = #tpu.pipeline_mode<synchronous>, transform_indices = @transform_0, window_bounds = array<i64: 16, 32>}, {pipeline_mode = #tpu.pipeline_mode<synchronous>, transform_indices = @transform_1, window_bounds = array<i64: 32, 384>}, {pipeline_mode = #tpu.pipeline_mode<synchronous>, transform_indices = @transform_2, window_bounds = array<i64: 24, 256>}, {pipeline_mode = #tpu.pipeline_mode<synchronous>, transform_indices = @transform_3, window_bounds = array<i64: 16, 32>}]} {
    %c0 = arith.constant 0 : index
    %c0_0 = arith.constant 0 : index
    %0 = vector.load %arg1[%c0, %c0_0] : memref<16x32xf32, #tpu.memory_space<vmem>>, vector<16x32xf32>
    %cst = arith.constant dense<0.000000e+00> : vector<16xf32>
    %1 = vector.multi_reduction <add>, %0, %cst [1] : vector<16x32xf32> to vector<16xf32>
    %2 = vector.shape_cast %1 : vector<16xf32> to vector<16x1xf32>
    %cst_1 = arith.constant 3.200000e+01 : f32
    %3 = vector.broadcast %cst_1 : f32 to vector<16x1xf32>
    %4 = arith.divf %2, %3 : vector<16x1xf32>
    %5 = vector.broadcast %4 : vector<16x1xf32> to vector<16x32xf32>
    %6 = arith.subf %0, %5 : vector<16x32xf32>
    %7 = arith.mulf %6, %6 : vector<16x32xf32>
    %cst_2 = arith.constant dense<0.000000e+00> : vector<16xf32>
    %8 = vector.multi_reduction <add>, %7, %cst_2 [1] : vector<16x32xf32> to vector<16xf32>
    %9 = vector.shape_cast %8 : vector<16xf32> to vector<16x1xf32>
    %cst_3 = arith.constant 3.200000e+01 : f32
    %10 = vector.broadcast %cst_3 : f32 to vector<16x1xf32>
    %11 = arith.divf %9, %10 : vector<16x1xf32>
    %12 = vector.broadcast %4 : vector<16x1xf32> to vector<16x32xf32>
    %13 = arith.subf %0, %12 : vector<16x32xf32>
    %cst_4 = arith.constant 9.99999974E-6 : f32
    %14 = vector.broadcast %cst_4 : f32 to vector<16x1xf32>
    %15 = arith.addf %11, %14 : vector<16x1xf32>
    %16 = math.rsqrt %15 : vector<16x1xf32>
    %17 = vector.broadcast %16 : vector<16x1xf32> to vector<16x32xf32>
    %18 = arith.mulf %13, %17 : vector<16x32xf32>
    %c0_5 = arith.constant 0 : index
    %c0_6 = arith.constant 0 : index
    %19 = vector.load %arg2[%c0_5, %c0_6] : memref<32x384xf32, #tpu.memory_space<vmem>>, vector<32x256xf32>
    %cst_7 = arith.constant dense<0.000000e+00> : vector<16x256xf32>
    %20 = tpu.matmul %18, %19, %cst_7 {dimension_numbers = #tpu.dot_dimension_numbers<[1], [0], [0], [1], [0, 0, 1, 1], [], []>} : vector<16x32xf32>, vector<32x256xf32>, vector<16x256xf32> -> vector<16x256xf32>
    %c16 = arith.constant 16 : index
    %c0_8 = arith.constant 0 : index
    %21 = vector.load %arg3[%c16, %c0_8] : memref<24x256xf32, #tpu.memory_space<vmem>>, vector<1x256xf32>
    %22 = vector.broadcast %21 : vector<1x256xf32> to vector<16x256xf32>
    %23 = arith.addf %20, %22 : vector<16x256xf32>
    %24 = vector.extract_strided_slice %23 {offsets = [0, 0], sizes = [16, 128], strides = [1, 1]} : vector<16x256xf32> to vector<16x128xf32>
    %c0_9 = arith.constant 0 : index
    %c0_10 = arith.constant 0 : index
    %25 = vector.load %arg3[%c0_9, %c0_10] : memref<24x256xf32, #tpu.memory_space<vmem>>, vector<16x128xf32>
    %26 = arith.mulf %24, %25 : vector<16x128xf32>
    %27 = vector.extract_strided_slice %26 {offsets = [0, 0], sizes = [16, 32], strides = [1, 1]} : vector<16x128xf32> to vector<16x32xf32>
    %28 = vector.extract_strided_slice %26 {offsets = [0, 32], sizes = [16, 32], strides = [1, 1]} : vector<16x128xf32> to vector<16x32xf32>
    %29 = arith.addf %27, %28 : vector<16x32xf32>
    %30 = vector.extract_strided_slice %26 {offsets = [0, 64], sizes = [16, 32], strides = [1, 1]} : vector<16x128xf32> to vector<16x32xf32>
    %31 = vector.extract_strided_slice %26 {offsets = [0, 96], sizes = [16, 32], strides = [1, 1]} : vector<16x128xf32> to vector<16x32xf32>
    %32 = arith.addf %30, %31 : vector<16x32xf32>
    %33 = vector.extract_strided_slice %23 {offsets = [0, 128], sizes = [16, 32], strides = [1, 1]} : vector<16x256xf32> to vector<16x32xf32>
    %34 = vector.extract_strided_slice %23 {offsets = [0, 160], sizes = [16, 32], strides = [1, 1]} : vector<16x256xf32> to vector<16x32xf32>
    %35 = tpu.iota {dimensions = array<i32: 1>} : vector<1x32xi32>
    %c0_i32 = arith.constant 0 : i32
    %36 = vector.broadcast %c0_i32 : i32 to vector<1x32xi32>
    %37 = arith.cmpi sge, %35, %36 : vector<1x32xi32>
    %c8_i32 = arith.constant 8 : i32
    %38 = vector.broadcast %c8_i32 : i32 to vector<1x32xi32>
    %39 = arith.cmpi slt, %35, %38 : vector<1x32xi32>
    %40 = arith.andi %37, %39 : vector<1x32xi1>
    %41 = arith.extui %40 : vector<1x32xi1> to vector<1x32xi32>
    %42 = arith.sitofp %41 : vector<1x32xi32> to vector<1x32xf32>
    %43 = vector.broadcast %42 : vector<1x32xf32> to vector<16x32xf32>
    %44 = arith.mulf %32, %43 : vector<16x32xf32>
    %c0_11 = arith.constant 0 : index
    %c0_12 = arith.constant 0 : index
    %45 = vector.load %arg5[%c0_11, %c0_12] : memref<64x32xf32, #tpu.memory_space<vmem>>, vector<16x32xf32>
    tpu.vector_store %arg5[%c0_11, %c0_12], %44 {strides = array<i32>} : memref<64x32xf32, #tpu.memory_space<vmem>>, vector<16x32xf32>,
    %46 = vector.broadcast %42 : vector<1x32xf32> to vector<16x32xf32>
    %47 = arith.mulf %33, %46 : vector<16x32xf32>
    %c0_13 = arith.constant 0 : index
    %c0_14 = arith.constant 0 : index
    %48 = vector.load %arg6[%c0_13, %c0_14] : memref<64x32xf32, #tpu.memory_space<vmem>>, vector<16x32xf32>
    tpu.vector_store %arg6[%c0_13, %c0_14], %47 {strides = array<i32>} : memref<64x32xf32, #tpu.memory_space<vmem>>, vector<16x32xf32>,
    %c8_i32_15 = arith.constant 8 : i32
    %49 = vector.broadcast %c8_i32_15 : i32 to vector<1x32xi32>
    %50 = arith.cmpi sge, %35, %49 : vector<1x32xi32>
    %c16_i32 = arith.constant 16 : i32
    %51 = vector.broadcast %c16_i32 : i32 to vector<1x32xi32>
    %52 = arith.cmpi slt, %35, %51 : vector<1x32xi32>
    %53 = arith.andi %50, %52 : vector<1x32xi1>
    %54 = arith.extui %53 : vector<1x32xi1> to vector<1x32xi32>
    %55 = arith.sitofp %54 : vector<1x32xi32> to vector<1x32xf32>
    %56 = vector.broadcast %55 : vector<1x32xf32> to vector<16x32xf32>
    %57 = arith.mulf %32, %56 : vector<16x32xf32>
    %c16_16 = arith.constant 16 : index
    %c0_17 = arith.constant 0 : index
    %58 = vector.load %arg5[%c16_16, %c0_17] : memref<64x32xf32, #tpu.memory_space<vmem>>, vector<16x32xf32>
    tpu.vector_store %arg5[%c16_16, %c0_17], %57 {strides = array<i32>} : memref<64x32xf32, #tpu.memory_space<vmem>>, vector<16x32xf32>,
    %59 = vector.broadcast %55 : vector<1x32xf32> to vector<16x32xf32>
    %60 = arith.mulf %33, %59 : vector<16x32xf32>
    %c16_18 = arith.constant 16 : index
    %c0_19 = arith.constant 0 : index
    %61 = vector.load %arg6[%c16_18, %c0_19] : memref<64x32xf32, #tpu.memory_space<vmem>>, vector<16x32xf32>
    tpu.vector_store %arg6[%c16_18, %c0_19], %60 {strides = array<i32>} : memref<64x32xf32, #tpu.memory_space<vmem>>, vector<16x32xf32>,
    %c16_i32_20 = arith.constant 16 : i32
    %62 = vector.broadcast %c16_i32_20 : i32 to vector<1x32xi32>
    %63 = arith.cmpi sge, %35, %62 : vector<1x32xi32>
    %c24_i32 = arith.constant 24 : i32
    %64 = vector.broadcast %c24_i32 : i32 to vector<1x32xi32>
    %65 = arith.cmpi slt, %35, %64 : vector<1x32xi32>
    %66 = arith.andi %63, %65 : vector<1x32xi1>
    %67 = arith.extui %66 : vector<1x32xi1> to vector<1x32xi32>
    %68 = arith.sitofp %67 : vector<1x32xi32> to vector<1x32xf32>
    %69 = vector.broadcast %68 : vector<1x32xf32> to vector<16x32xf32>
    %70 = arith.mulf %32, %69 : vector<16x32xf32>
    %c32 = arith.constant 32 : index
    %c0_21 = arith.constant 0 : index
    %71 = vector.load %arg5[%c32, %c0_21] : memref<64x32xf32, #tpu.memory_space<vmem>>, vector<16x32xf32>
    tpu.vector_store %arg5[%c32, %c0_21], %70 {strides = array<i32>} : memref<64x32xf32, #tpu.memory_space<vmem>>, vector<16x32xf32>,
    %72 = vector.broadcast %68 : vector<1x32xf32> to vector<16x32xf32>
    %73 = arith.mulf %33, %72 : vector<16x32xf32>
    %c32_22 = arith.constant 32 : index
    %c0_23 = arith.constant 0 : index
    %74 = vector.load %arg6[%c32_22, %c0_23] : memref<64x32xf32, #tpu.memory_space<vmem>>, vector<16x32xf32>
    tpu.vector_store %arg6[%c32_22, %c0_23], %73 {strides = array<i32>} : memref<64x32xf32, #tpu.memory_space<vmem>>, vector<16x32xf32>,
    %c24_i32_24 = arith.constant 24 : i32
    %75 = vector.broadcast %c24_i32_24 : i32 to vector<1x32xi32>
    %76 = arith.cmpi sge, %35, %75 : vector<1x32xi32>
    %c32_i32 = arith.constant 32 : i32
    %77 = vector.broadcast %c32_i32 : i32 to vector<1x32xi32>
    %78 = arith.cmpi slt, %35, %77 : vector<1x32xi32>
    %79 = arith.andi %76, %78 : vector<1x32xi1>
    %80 = arith.extui %79 : vector<1x32xi1> to vector<1x32xi32>
    %81 = arith.sitofp %80 : vector<1x32xi32> to vector<1x32xf32>
    %82 = vector.broadcast %81 : vector<1x32xf32> to vector<16x32xf32>
    %83 = arith.mulf %32, %82 : vector<16x32xf32>
    %c48 = arith.constant 48 : index
    %c0_25 = arith.constant 0 : index
    %84 = vector.load %arg5[%c48, %c0_25] : memref<64x32xf32, #tpu.memory_space<vmem>>, vector<16x32xf32>
    tpu.vector_store %arg5[%c48, %c0_25], %83 {strides = array<i32>} : memref<64x32xf32, #tpu.memory_space<vmem>>, vector<16x32xf32>,
    %85 = vector.broadcast %81 : vector<1x32xf32> to vector<16x32xf32>
    %86 = arith.mulf %33, %85 : vector<16x32xf32>
    %c48_26 = arith.constant 48 : index
    %c0_27 = arith.constant 0 : index
    %87 = vector.load %arg6[%c48_26, %c0_27] : memref<64x32xf32, #tpu.memory_space<vmem>>, vector<16x32xf32>
    tpu.vector_store %arg6[%c48_26, %c0_27], %86 {strides = array<i32>} : memref<64x32xf32, #tpu.memory_space<vmem>>, vector<16x32xf32>,
    %c0_28 = arith.constant 0 : index
    %c0_29 = arith.constant 0 : index
    %88 = vector.load %arg5[%c0_28, %c0_29] : memref<64x32xf32, #tpu.memory_space<vmem>>, vector<64x32xf32>
    %cst_30 = arith.constant dense<0.000000e+00> : vector<16x64xf32>
    %89 = tpu.matmul %29, %88, %cst_30 {dimension_numbers = #tpu.dot_dimension_numbers<[1], [1], [0], [0], [0, 0, 1, 0], [], []>} : vector<16x32xf32>, vector<64x32xf32>, vector<16x64xf32> -> vector<16x64xf32>
    %c0_31 = arith.constant 0 : index
    %c128 = arith.constant 128 : index
    %90 = vector.load %arg3[%c0_31, %c128] : memref<24x256xf32, #tpu.memory_space<vmem>>, vector<16x64xf32>
    %91 = arith.mulf %89, %90 : vector<16x64xf32>
    %c0_32 = arith.constant 0 : index
    %c0_33 = arith.constant 0 : index
    %92 = vector.load %arg6[%c0_32, %c0_33] : memref<64x32xf32, #tpu.memory_space<vmem>>, vector<64x32xf32>
    %cst_34 = arith.constant dense<0.000000e+00> : vector<16x32xf32>
    %93 = tpu.matmul %91, %92, %cst_34 {dimension_numbers = #tpu.dot_dimension_numbers<[1], [0], [0], [1], [0, 0, 1, 1], [], []>} : vector<16x64xf32>, vector<64x32xf32>, vector<16x32xf32> -> vector<16x32xf32>
    %c0_35 = arith.constant 0 : index
    %c320 = arith.constant 320 : index
    %94 = vector.load %arg2[%c0_35, %c320] : memref<32x384xf32, #tpu.memory_space<vmem>>, vector<32x32xf32>
    %cst_36 = arith.constant dense<0.000000e+00> : vector<16x32xf32>
    %95 = tpu.matmul %93, %94, %cst_36 {dimension_numbers = #tpu.dot_dimension_numbers<[1], [0], [0], [1], [0, 0, 1, 1], [], []>} : vector<16x32xf32>, vector<32x32xf32>, vector<16x32xf32> -> vector<16x32xf32>
    %96 = arith.subf %93, %95 : vector<16x32xf32>
    %97 = arith.mulf %96, %96 : vector<16x32xf32>
    %cst_37 = arith.constant dense<0.000000e+00> : vector<16x32xf32>
    %98 = tpu.matmul %97, %94, %cst_37 {dimension_numbers = #tpu.dot_dimension_numbers<[1], [0], [0], [1], [0, 0, 1, 1], [], []>} : vector<16x32xf32>, vector<32x32xf32>, vector<16x32xf32> -> vector<16x32xf32>
    %cst_38 = arith.constant 9.99999974E-6 : f32
    %99 = vector.broadcast %cst_38 : f32 to vector<16x32xf32>
    %100 = arith.addf %98, %99 : vector<16x32xf32>
    %101 = math.rsqrt %100 : vector<16x32xf32>
    %102 = arith.mulf %96, %101 : vector<16x32xf32>
    %103 = arith.negf %34 : vector<16x32xf32>
    %104 = math.exp %103 : vector<16x32xf32>
    %cst_39 = arith.constant 1.000000e+00 : f32
    %105 = vector.broadcast %cst_39 : f32 to vector<16x32xf32>
    %106 = arith.addf %105, %104 : vector<16x32xf32>
    %107 = arith.divf %105, %106 : vector<16x32xf32>
    %108 = arith.mulf %34, %107 : vector<16x32xf32>
    %109 = arith.mulf %108, %102 : vector<16x32xf32>
    %c0_40 = arith.constant 0 : index
    %c0_41 = arith.constant 0 : index
    %110 = vector.load %arg7[%c0_40, %c0_41] : memref<16x64xf32, #tpu.memory_space<vmem>>, vector<16x32xf32>
    tpu.vector_store %arg7[%c0_40, %c0_41], %109 {strides = array<i32>} : memref<16x64xf32, #tpu.memory_space<vmem>>, vector<16x32xf32>,
    %c0_42 = arith.constant 0 : index
    %c32_43 = arith.constant 32 : index
    %111 = vector.load %arg7[%c0_42, %c32_43] : memref<16x64xf32, #tpu.memory_space<vmem>>, vector<16x32xf32>
    tpu.vector_store %arg7[%c0_42, %c32_43], %108 {strides = array<i32>} : memref<16x64xf32, #tpu.memory_space<vmem>>, vector<16x32xf32>,
    %c0_44 = arith.constant 0 : index
    %c0_45 = arith.constant 0 : index
    %112 = vector.load %arg7[%c0_44, %c0_45] : memref<16x64xf32, #tpu.memory_space<vmem>>, vector<16x64xf32>
    %c0_46 = arith.constant 0 : index
    %c256 = arith.constant 256 : index
    %113 = vector.load %arg2[%c0_46, %c256] : memref<32x384xf32, #tpu.memory_space<vmem>>, vector<32x64xf32>
    %cst_47 = arith.constant dense<0.000000e+00> : vector<16x32xf32>
    %114 = tpu.matmul %112, %113, %cst_47 {dimension_numbers = #tpu.dot_dimension_numbers<[1], [1], [0], [0], [0, 0, 1, 0], [], []>} : vector<16x64xf32>, vector<32x64xf32>, vector<16x32xf32> -> vector<16x32xf32>
    %115 = arith.addf %0, %114 : vector<16x32xf32>
    %c0_48 = arith.constant 0 : index
    %c0_49 = arith.constant 0 : index
    %116 = vector.load %arg4[%c0_48, %c0_49] : memref<16x32xf32, #tpu.memory_space<vmem>>, vector<16x32xf32>
    tpu.vector_store %arg4[%c0_48, %c0_49], %115 {strides = array<i32>} : memref<16x32xf32, #tpu.memory_space<vmem>>, vector<16x32xf32>,
    return
  }
  func.func @transform_0(%arg0: i32) -> (i32, i32) {
    %c0_i32 = arith.constant 0 : i32
    %c0_i32_0 = arith.constant 0 : i32
    %c0_i32_1 = arith.constant 0 : i32
    return %c0_i32, %c0_i32_0 : i32, i32
  }
  func.func @transform_1(%arg0: i32) -> (i32, i32) {
    %c0_i32 = arith.constant 0 : i32
    %c0_i32_0 = arith.constant 0 : i32
    %c0_i32_1 = arith.constant 0 : i32
    return %c0_i32, %c0_i32_0 : i32, i32
  }
  func.func @transform_2(%arg0: i32) -> (i32, i32) {
    %c0_i32 = arith.constant 0 : i32
    %c0_i32_0 = arith.constant 0 : i32
    %c0_i32_1 = arith.constant 0 : i32
    return %c0_i32, %c0_i32_0 : i32, i32
  }
  func.func @transform_3(%arg0: i32) -> (i32, i32) {
    %c0_i32 = arith.constant 0 : i32
    %c0_i32_0 = arith.constant 0 : i32
    %c0_i32_1 = arith.constant 0 : i32
    return %c0_i32, %c0_i32_0 : i32, i32
  }
}

</mosaic_0001>

<bundles_post_ra>
// kernel: retention_block.1
= control target key start
LH: loop header
LB: loop body
LE: loop exit
PB: predicated region body
PF: predicated region fallthrough
CT: control target
= control target key end

     0   :  { %8 = vsyncpa [#allocation6], 0  ;;  %s1324_s0 = inlined_call_operand.vmem [shape: f32[16,32], index: 0, kind: input, shape index: {}, may-alias: {0,3}]   ;;  %s1325_s1 = inlined_call_operand.hbm [shape: f32[32,384], index: 1, kind: input, shape index: {}]   ;;  %s1326_s2 = inlined_call_operand.hbm [shape: f32[24,256], index: 2, kind: input, shape index: {}]   ;;  %s1327_s3 = inlined_call_operand.vmem [shape: f32[16,32], index: 3, kind: output, shape index: {}, may-alias: {0,3}]  }
   0x1   :  { %9 = vsyncpa [#allocation8], 0  ;;  %s1134_s12 = smov [#allocation5]   ;;  %s1086_s16 = scalar_lea.hbm %s1325_s1, 1536 }
   0x2   :  { %s17_s13 = sshll.u32 %s1134_s12, 4  ;;  %p1087_p0 = scmp.ne.s32.totalorder %s1325_s1, %s1086_s16  ;;  %s18_s13 = int_to_ptr.vmem [resolvable:$true] %s17_s13 }
   0x3   :  { %p1090_p1 = scmp.lt.u32.totalorder %s1086_s16, %s1325_s1 }
   0x5   :  { %p1092_p2 = pnand %p1090_p1, %p1087_p0 }
   0x7   :  { %1095 = shalt.err (!%p1092_p2)
}
   0x8   :  { %s1096_s21 = scalar_lea.vmem %s18_s13, 1536  ;;  %p1101_p4 = scmp.lt.s32.totalorder %s18_s13, %s18_s13 }
   0x9   :  { %p1097_p3 = scmp.ne.s32.totalorder %s18_s13, %s1096_s21  ;;  %p1102_p5 = scmp.lt.s32.totalorder %s1096_s21, %s1096_s21 }
   0xb   :  { %p1103_p6 = por %p1102_p5, %p1101_p4 }
   0xd   :  { %p1104_p7 = pnand %p1103_p6, %p1097_p3 }
   0xf   :  { %1107 = shalt.err (!%p1104_p7)
}
  0x10   :  { %s1135_s22 = smov 384   ;;  %s1136_s23 = smov 24  }
  0x11   :  { %23 = dma.hbm_to_vmem [thread:$0]  %s1325_s1, 1536, %s18_s13, [#allocation6], %s1135_s22, %s1135_s22, %s1136_s23  }
  0x12   :  { %s1137_s26 = smov [#allocation7]   ;;  %s1108_s30 = scalar_lea.hbm %s1326_s2, 768 }
  0x13   :  { %s29_s27 = sshll.u32 %s1137_s26, 4  ;;  %p1109_p8 = scmp.ne.s32.totalorder %s1326_s2, %s1108_s30  ;;  %s30_s27 = int_to_ptr.vmem [resolvable:$true] %s29_s27 }
  0x14   :  { %p1112_p9 = scmp.lt.u32.totalorder %s1108_s30, %s1326_s2 }
  0x16   :  { %p1114_p10 = pnand %p1112_p9, %p1109_p8 }
  0x18   :  { %1117 = shalt.err (!%p1114_p10)
}
  0x19   :  { %s1118_s8 = scalar_lea.vmem %s30_s27, 768  ;;  %p1123_p12 = scmp.lt.s32.totalorder %s30_s27, %s30_s27 }
  0x1a   :  { %p1119_p11 = scmp.ne.s32.totalorder %s30_s27, %s1118_s8  ;;  %p1124_p13 = scmp.lt.s32.totalorder %s1118_s8, %s1118_s8 }
  0x1c   :  { %p1125_p0 = por %p1124_p13, %p1123_p12 }
  0x1e   :  { %p1126_p1 = pnand %p1125_p0, %p1119_p11 }
  0x20   :  { %1129 = shalt.err (!%p1126_p1)
}
  0x21   :  { %s1138_s1 = smov 256   ;;  %s1139_s9 = smov 16  }
  0x22   :  { %35 = dma.hbm_to_vmem [thread:$0]  %s1326_s2, 768, %s30_s27, [#allocation8], %s1138_s1, %s1138_s1, %s1139_s9  }
  0x23   :  { %1130 = dma.done.wait [#allocation6], 1536  }
  0x24   :  { %1131 = vsyncadd [#allocation6], 4294965760 }
  0x25   :  { %1132 = dma.done.wait [#allocation8], 768  }
  0x26   :  { %1133 = vsyncadd [#allocation8], 4294966528  ;;  %vm44_vm0 = vcmask 261120   ;;  %v1191_v0 = vld [vmem:[%s1324_s0] sm:$0xff]  ;;  %v1196_v1 = vld [vmem:[%s1324_s0 + $0x8] sm:$0xff]  ;;  %v1140_v25 = vmov 0.0   ;;  %v83_v37 = vlaneseq }
  0x27   :  { %v45_v2 = vsel %vm44_vm0, %v1191_v0, 0.0  ;;  %v48_v3 = vsel %vm44_vm0, %v1196_v1, 0.0  ;;  %v73_v14 = vld [vmem:[#allocation5 + $0x8] sm:$0xff]  ;;  %v75_v15 = vld [vmem:[#allocation5 + $0x20] sm:$0xff]  ;;  %v74_v18 = vld [vmem:[#allocation5 + $0x18] sm:$0xff]  ;;  %163 = vmatprep.mubr.f32.mxu0 %v1140_v25  ;;  %s1141_s0 = smov 96  }
  0x28   :  { %46 = vadd.xlane.f32.xlu0 %v45_v2  ;;  %v974_v16 = vpack.c.bf16 %v75_v15, %v73_v14  ;;  %v72_v17 = vld [vmem:[#allocation5] sm:$0xff]  ;;  %v77_v20 = vld [vmem:[#allocation5 + $0x38] sm:$0xff]  ;;  %v79_v21 = vld [vmem:[#allocation5 + $0x50] sm:$0xff]  ;;  %v84_v38 = vshrl.u32 %v83_v37, 7  ;;  %v191_v39 = vand.u32 127, %v83_v37  ;;  %s1142_s2 = smov 64  }
  0x29   :  { %v976_v19 = vpack.c.bf16 %v74_v18, %v72_v17  ;;  %v76_v22 = vld [vmem:[#allocation5 + $0x30] sm:$0xff]  ;;  %v978_v23 = vpack.c.bf16 %v79_v21, %v77_v20  ;;  %v78_v24 = vld [vmem:[#allocation5 + $0x48] sm:$0xff]  ;;  %v176_v46 = vld [vmem:[#allocation7] sm:$0xff]  ;;  %vm417_vm12 = vcmask 523264   ;;  %s1143_s16 = smov 32   ;;  %vm723_vm14 = vcmask 523520  }
  0x2a   :  { %975 = vmatprep.subr.bf16.mxu0 %v974_v16  ;;  %v980_v26 = vpack.c.bf16 %v78_v24, %v76_v22  ;;  %v85_v40 = vsub.s32 0, %v84_v38  ;;  %vm242_vm1 = vcmp.ge.s32.totalorder %v191_v39, 16  ;;  %vm243_vm2 = vcmp.lt.s32.totalorder %v191_v39, 24  ;;  %v81_v41 = vld [vmem:[#allocation7 + $0x20] ss:$8 sm:$0x3]  ;;  %vm1249_vm11 = vmpackc.low %vm44_vm0, %vm44_vm0 }
  0x2b   :  { %977 = vmatpush1.bf16.msra.mxu0 %v976_v19  ;;  %v89_v42 = vsub.s32 1, %v84_v38  ;;  %vm217_vm3 = vcmp.ge.s32.totalorder %v191_v39, 8  ;;  %vm218_vm4 = vcmp.lt.s32.totalorder %v191_v39, 16  ;;  %vm267_vm5 = vcmp.ge.s32.totalorder %v191_v39, 24  ;;  %vm244_vm7 = vmand %vm242_vm1, %vm243_vm2  ;;  %v177_v56 = vld [vmem:[#allocation7 + $0x10] sm:$0xff] }
  0x2c   :  { %49 = vadd.xlane.f32.xlu0 %v48_v3  ;;  %979 = vmatprep.subr.bf16.mxu0 %v978_v23  ;;  %vm268_vm6 = vcmp.lt.s32.totalorder %v191_v39, 32  ;;  %v86_v43 = vrot.slane %v81_v41, %v85_v40  ;;  %vm219_vm8 = vmand %vm217_vm3, %vm218_vm4  ;;  %vm193_vm9 = vcmp.lt.s32.totalorder %v191_v39, 8  ;;  %v839_v47 = vsel %vm244_vm7, 1.0, %v1140_v25 }
  0x2d   :  { %v90_v44 = vrot.slane %v81_v41, %v89_v42  ;;  %vm269_vm10 = vmand %vm267_vm5, %vm268_vm6  ;;  %v837_v50 = vsel %vm193_vm9, 1.0, %v1140_v25  ;;  %v838_v51 = vsel %vm219_vm8, 1.0, %v1140_v25 }
  0x2e   :  { %v840_v52 = vsel %vm269_vm10, 1.0, %v1140_v25  ;;  %vm1290_vm13 = vmpackc.low %vm417_vm12, %vm417_vm12 }
  0x2f   :  { %981 = vmatpush1.bf16.msra.mxu0 %v980_v26 }
  0xb5   :  { %v47_v4 = vpop.xlane.xlu0 %46 }
  0xb6   :  { %v52_v5 = vmul.f32 0.03125, %v47_v4 }
  0xb8   :  { %v54_v6 = vsub.f32 %v1191_v0, %v52_v5 }
  0xb9   :  { %v50_v7 = vpop.xlane.xlu0 %49 }
  0xba   :  { %v53_v8 = vmul.f32 0.03125, %v50_v7  ;;  %v56_v9 = vmul.f32 %v54_v6, %v54_v6 }
  0xbc   :  { %v55_v10 = vsub.f32 %v1196_v1, %v53_v8  ;;  %v58_v11 = vsel %vm44_vm0, %v56_v9, 0.0 }
  0xbd   :  { %59 = vadd.xlane.f32.xlu1 %v58_v11 }
  0xbe   :  { %v57_v12 = vmul.f32 %v55_v10, %v55_v10 }
  0xc0   :  { %v61_v13 = vsel %vm44_vm0, %v57_v12, 0.0 }
  0xc1   :  { %62 = vadd.xlane.f32.xlu1 %v61_v13 }
 0x14a   :  { %v60_v27 = vpop.xlane.xlu1 %59 }
 0x14b   :  { %v64_v28 = vmul.f32 0.03125, %v60_v27 }
 0x14d   :  { %v66_v29 = vadd.f32 1e-05, %v64_v28 }
 0x14e   :  { %v63_v30 = vpop.xlane.xlu1 %62 }
 0x14f   :  { %1070 = vrsqrt.f32 %v66_v29  ;;  %v65_v31 = vmul.f32 0.03125, %v63_v30 }
 0x151   :  { %v67_v32 = vadd.f32 1e-05, %v65_v31 }
 0x153   :  { %1072 = vrsqrt.f32 %v67_v32 }
 0x159   :  { %v1071_v33 = vpop.eup %1070 }
 0x15a   :  { %v70_v34 = vmul.f32 %v1071_v33, %v54_v6 }
 0x15c   :  { %835 = vmatmul.mubr.msk.f32.vlgmr.msra.gmra.mrb[0].mxu0 %vm44_vm0, %v70_v34 }
 0x15d   :  { %v1073_v35 = vpop.eup %1072  ;;  %169 = vmatprep.mubr.f32.mxu0 %v1140_v25 }
 0x15e   :  { %v71_v36 = vmul.f32 %v1073_v35, %v55_v10 }
 0x160   :  { %836 = vmatmul.mubr.msk.f32.gmra.mrb[2].mxu0 %vm44_vm0, %v71_v36 }
 0x22f   :  { %v165_v45 = vpop.f32.mrb[0].mxu0 }
 0x230   :  { %v166_v48 = vadd.f32 %v165_v45, %v86_v43  ;;  %v167_v49 = vpop.f32.mrb[1].mxu0 }
 0x231   :  { %v1208_v53 = vadd.f32 %v167_v49, %v90_v44 }
 0x232   :  { %v178_v54 = vmul.f32 %v176_v46, %v166_v48 }
 0x233   :  { %v171_v55 = vpop.f32.mrb[2].mxu0  ;;  %v263_v57 = vmul.f32 %v839_v47, %v1208_v53  ;;  %v213_v58 = vmul.f32 %v837_v50, %v1208_v53  ;;  %v238_v59 = vmul.f32 %v838_v51, %v1208_v53  ;;  %v288_v60 = vmul.f32 %v840_v52, %v1208_v53 }
 0x234   :  { %v172_v61 = vadd.f32 %v171_v55, %v86_v43  ;;  %182 = vrot.lane.b32.xlu0 %v178_v54, %s1141_s0  ;;  %v173_v62 = vpop.f32.mrb[3].mxu0 }
 0x235   :  { %v1215_v63 = vadd.f32 %v173_v62, %v90_v44  ;;  %265 = vst.msk [vmem:[#allocation3 + $0x20] sm:$0xff] %vm44_vm0, %v263_v57  ;;  %215 = vst.msk [vmem:[#allocation3] sm:$0xff] %vm44_vm0, %v213_v58  ;;  %v499_v57 = vld [vmem:[#allocation5 + $0x10] sm:$0xff]  ;;  %v500_v58 = vld [vmem:[#allocation5 + $0x28] sm:$0xff] }
 0x236   :  { %240 = vst.msk [vmem:[#allocation3 + $0x10] sm:$0xff] %vm44_vm0, %v238_v59  ;;  %290 = vst.msk [vmem:[#allocation3 + $0x30] sm:$0xff] %vm44_vm0, %v288_v60  ;;  %v179_v2 = vmul.f32 %v177_v56, %v172_v61  ;;  %v1274_v59 = vld [vmem:[#allocation5 + $0x40] sm:$0xff]  ;;  %v1060_v60 = vpack.i.bf16 %v500_v58, %v499_v57  ;;  %v1276_v61 = vld [vmem:[#allocation5 + $0x58] sm:$0xff] }
 0x237   :  { %v264_v3 = vmul.f32 %v839_v47, %v1215_v63  ;;  %v214_v4 = vmul.f32 %v837_v50, %v1215_v63  ;;  %v239_v5 = vmul.f32 %v838_v51, %v1215_v63  ;;  %v289_v6 = vmul.f32 %v840_v52, %v1215_v63 }
 0x238   :  { %248 = vrot.lane.b32.xlu0 %v839_v47, %s1142_s2  ;;  %184 = vrot.lane.b32.xlu1 %v179_v2, %s1141_s0  ;;  %v1065_v62 = vpack.i.bf16 %v1276_v61, %v1274_v59 }
 0x239   :  { %266 = vst.msk [vmem:[#allocation3 + $0x28] sm:$0xff] %vm44_vm0, %v264_v3  ;;  %216 = vst.msk [vmem:[#allocation3 + $0x8] sm:$0xff] %vm44_vm0, %v214_v4 }
 0x23a   :  { %241 = vst.msk [vmem:[#allocation3 + $0x18] sm:$0xff] %vm44_vm0, %v239_v5  ;;  %291 = vst.msk [vmem:[#allocation3 + $0x38] sm:$0xff] %vm44_vm0, %v289_v6 }
 0x23c   :  { %198 = vrot.lane.b32.xlu1 %v837_v50, %s1142_s2  ;;  %v409_v7 = vld [vmem:[#allocation3] sm:$0xff] }
 0x23d   :  { %v411_v11 = vld [vmem:[#allocation3 + $0x10] sm:$0xff]  ;;  %v413_v14 = vld [vmem:[#allocation3 + $0x20] sm:$0xff] }
 0x23e   :  { %v415_v17 = vld [vmem:[#allocation3 + $0x30] sm:$0xff] }
 0x240   :  { %223 = vrot.lane.b32.xlu1 %v838_v51, %s1142_s2  ;;  %v410_v8 = vld [vmem:[#allocation3 + $0x8] sm:$0xff] }
 0x241   :  { %v412_v9 = vld [vmem:[#allocation3 + $0x18] sm:$0xff]  ;;  %v1006_v10 = vpack.c.bf16 %v410_v8, %v409_v7  ;;  %v414_v13 = vld [vmem:[#allocation3 + $0x28] sm:$0xff] }
 0x242   :  { %v1010_v12 = vpack.c.bf16 %v412_v9, %v411_v11  ;;  %v1014_v15 = vpack.c.bf16 %v414_v13, %v413_v14  ;;  %v416_v16 = vld [vmem:[#allocation3 + $0x38] sm:$0xff]  ;;  %v406_v11 = vld [vmem:[#allocation7 + $0x18] sm:$0xff] }
 0x243   :  { %1007 = vmatprep.subr.bf16.mxu0 %v1006_v10  ;;  %v1018_v18 = vpack.c.bf16 %v416_v16, %v415_v17  ;;  %v405_v7 = vld [vmem:[#allocation7 + $0x8] sm:$0xff] }
 0x244   :  { %1009 = vmatpush3.bf16.msra.mxu0 %v1006_v10  ;;  %273 = vrot.lane.b32.xlu1 %v840_v52, %s1142_s2 }
 0x245   :  { %1011 = vmatprep.subr.bf16.mxu0 %v1010_v12 }
 0x248   :  { %1013 = vmatpush3.bf16.msra.mxu0 %v1010_v12 }
 0x249   :  { %1015 = vmatprep.subr.bf16.mxu0 %v1014_v15 }
 0x24c   :  { %1017 = vmatpush3.bf16.msra.mxu0 %v1014_v15 }
 0x24d   :  { %1019 = vmatprep.subr.bf16.mxu0 %v1018_v18 }
 0x250   :  { %1021 = vmatpush3.bf16.msra.mxu0 %v1018_v18 }
 0x2a6   :  { %v183_v19 = vpop.permute.xlu0 %182 }
 0x2a7   :  { %v188_v20 = vadd.f32 %v183_v19, %v178_v54 }
 0x2a9   :  { %919 = vmatprep.mubr.msk.f32.mxu1 %vm44_vm0, %v188_v20 }
 0x2aa   :  { %v185_v21 = vpop.permute.xlu1 %184  ;;  %v249_v29 = vpop.permute.xlu0 %248 }
 0x2ab   :  { %v189_v22 = vadd.f32 %v185_v21, %v179_v2  ;;  %v251_v30 = vmul.f32 %v249_v29, %v188_v20 }
 0x2ad   :  { %v252_v31 = vmul.f32 %v249_v29, %v189_v22 }
 0x2ae   :  { %v199_v23 = vpop.permute.xlu1 %198 }
 0x2af   :  { %v201_v24 = vmul.f32 %v199_v23, %v188_v20  ;;  %v202_v25 = vmul.f32 %v199_v23, %v189_v22 }
 0x2b1   :  { %207 = vrot.lane.b32.xlu1 %v202_v25, %s1142_s2  ;;  %205 = vrot.lane.b32.xlu0 %v201_v24, %s1142_s2 }
 0x2b2   :  { %v224_v26 = vpop.permute.xlu1 %223 }
 0x2b3   :  { %v226_v27 = vmul.f32 %v224_v26, %v188_v20  ;;  %v227_v28 = vmul.f32 %v224_v26, %v189_v22 }
 0x2b5   :  { %232 = vrot.lane.b32.xlu1 %v227_v28, %s1142_s2  ;;  %230 = vrot.lane.b32.xlu0 %v226_v27, %s1142_s2  ;;  %v1038_v28 = vpack.c.bf16 %v500_v58, %v499_v57 }
 0x2b6   :  { %v274_v32 = vpop.permute.xlu1 %273 }
 0x2b7   :  { %v276_v33 = vmul.f32 %v274_v32, %v188_v20  ;;  %v277_v34 = vmul.f32 %v274_v32, %v189_v22 }
 0x2b9   :  { %257 = vrot.lane.b32.xlu1 %v252_v31, %s1142_s2  ;;  %255 = vrot.lane.b32.xlu0 %v251_v30, %s1142_s2 }
 0x2bd   :  { %282 = vrot.lane.b32.xlu1 %v277_v34, %s1142_s2  ;;  %280 = vrot.lane.b32.xlu0 %v276_v33, %s1142_s2  ;;  %v858_v34 = vmul.f32 -1.442695, %v1215_v63 }
 0x2c1   :  { %1061 = vrot.lane.b32.xlu0 %v1060_v60, %s1142_s2  ;;  %1066 = vrot.lane.b32.xlu1 %v1065_v62, %s1142_s2 }
 0x323   :  { %v208_v35 = vpop.permute.xlu1 %207  ;;  %v206_v36 = vpop.permute.xlu0 %205 }
 0x324   :  { %212 = vst.msk [vmem:[#allocation2 + $0x8] sm:$0xff] %vm44_vm0, %v208_v35  ;;  %211 = vst.msk [vmem:[#allocation2] sm:$0xff] %vm44_vm0, %v206_v36  ;;  %v857_v35 = vmul.f32 -1.442695, %v1208_v53 }
 0x327   :  { %v233_v37 = vpop.permute.xlu1 %232  ;;  %v231_v38 = vpop.permute.xlu0 %230 }
 0x328   :  { %237 = vst.msk [vmem:[#allocation2 + $0x18] sm:$0xff] %vm44_vm0, %v233_v37  ;;  %236 = vst.msk [vmem:[#allocation2 + $0x10] sm:$0xff] %vm44_vm0, %v231_v38 }
 0x32b   :  { %v258_v39 = vpop.permute.xlu1 %257  ;;  %v256_v40 = vpop.permute.xlu0 %255  ;;  %v292_v41 = vld [vmem:[#allocation2] sm:$0xff]  ;;  %v293_v42 = vld [vmem:[#allocation2 + $0x8] sm:$0xff] }
 0x32c   :  { %262 = vst.msk [vmem:[#allocation2 + $0x28] sm:$0xff] %vm44_vm0, %v258_v39  ;;  %261 = vst.msk [vmem:[#allocation2 + $0x20] sm:$0xff] %vm44_vm0, %v256_v40  ;;  %v982_v44 = vpack.c.bf16 %v293_v42, %v292_v41  ;;  %v1044_v40 = vpack.c.bf16 %v1276_v61, %v1274_v59 }
 0x32e   :  { %984 = vmatprep.subr.msk.bf16.mxu1 %vm1249_vm11, %v982_v44 }
 0x32f   :  { %v283_v45 = vpop.permute.xlu1 %282  ;;  %987 = vmatpush3.bf16.xpose.msk.msra.mxu1 %vm1249_vm11, %v982_v44  ;;  %v281_v46 = vpop.permute.xlu0 %280  ;;  %v294_v47 = vld [vmem:[#allocation2 + $0x10] sm:$0xff]  ;;  %v295_v48 = vld [vmem:[#allocation2 + $0x18] sm:$0xff] }
 0x330   :  { %287 = vst.msk [vmem:[#allocation2 + $0x38] sm:$0xff] %vm44_vm0, %v283_v45  ;;  %286 = vst.msk [vmem:[#allocation2 + $0x30] sm:$0xff] %vm44_vm0, %v281_v46  ;;  %v988_v49 = vpack.c.bf16 %v295_v48, %v294_v47 }
 0x332   :  { %990 = vmatprep.subr.msk.bf16.mxu1 %vm1249_vm11, %v988_v49 }
 0x333   :  { %v296_v50 = vld [vmem:[#allocation2 + $0x20] sm:$0xff]  ;;  %v297_v51 = vld [vmem:[#allocation2 + $0x28] sm:$0xff]  ;;  %v1062_v2 = vpop.permute.xlu0 %1061  ;;  %v1067_v5 = vpop.permute.xlu1 %1066 }
 0x334   :  { %v994_v52 = vpack.c.bf16 %v297_v51, %v296_v50  ;;  %v1064_v3 = vunpack.i.h.bf16 %v1062_v2  ;;  %v1063_v4 = vunpack.i.l.bf16 %v1062_v2  ;;  %v1069_v8 = vunpack.i.h.bf16 %v1067_v5 }
 0x335   :  { %v1068_v9 = vunpack.i.l.bf16 %v1067_v5 }
 0x336   :  { %v1022_v6 = vpack.c.bf16 %v1064_v3, %v1063_v4 }
 0x337   :  { %993 = vmatpush3.bf16.xpose.msk.msra.mxu1 %vm1249_vm11, %v988_v49  ;;  %v298_v54 = vld [vmem:[#allocation2 + $0x30] sm:$0xff]  ;;  %v299_v55 = vld [vmem:[#allocation2 + $0x38] sm:$0xff]  ;;  %v1026_v15 = vpack.c.bf16 %v1069_v8, %v1068_v9 }
 0x338   :  { %996 = vmatprep.subr.msk.bf16.mxu1 %vm1249_vm11, %v994_v52  ;;  %v1000_v56 = vpack.c.bf16 %v299_v55, %v298_v54  ;;  %1023 = vmatprep.subr.bf16.mxu0 %v1022_v6 }
 0x33f   :  { %999 = vmatpush3.bf16.xpose.msk.msra.mxu1 %vm1249_vm11, %v994_v52 }
 0x340   :  { %1002 = vmatprep.subr.msk.bf16.mxu1 %vm1249_vm11, %v1000_v56 }
 0x347   :  { %1005 = vmatpush3.bf16.xpose.msk.msra.mxu1 %vm1249_vm11, %v1000_v56 }
 0x348   :  { %1040 = vmatprep.subr.msk.bf16.mxu1 %vm1290_vm13, %v1038_v28 }
 0x34e   :  { %920 = vmatmul.mubr.msk.f32.vlgmr.msra.gmra.mrb[0].mxu1 %vm44_vm0, %v189_v22 }
 0x34f   :  { %1043 = vmatpush3.bf16.xpose.msk.msra.mxu1 %vm1290_vm13, %v1038_v28 }
 0x350   :  { %1046 = vmatprep.subr.msk.bf16.mxu1 %vm1290_vm13, %v1044_v40 }
 0x357   :  { %1049 = vmatpush3.bf16.xpose.msk.msra.mxu1 %vm1290_vm13, %v1044_v40 }
 0x421   :  { %v921_v10 = vpop.f32.mrb[0].mxu1 }
 0x422   :  { %v396_v12 = vpop.f32.mrb[1].mxu1  ;;  %v408_v14 = vmul.f32 %v921_v10, %v406_v11 }
 0x423   :  { %v407_v13 = vmul.f32 %v405_v7, %v396_v12 }
 0x425   :  { %938 = vmatprep.mubr.msk.f32.mxu0 %vm417_vm12, %v407_v13 }
 0x426   :  { %939 = vmatmul.mubr.msk.f32.vlgmr.msra.gmra.mrb[4].mxu0 %vm417_vm12, %v408_v14 }
 0x427   :  { %1025 = vmatpush3.bf16.msra.mxu0 %v1022_v6 }
 0x428   :  { %1027 = vmatprep.subr.bf16.mxu0 %v1026_v15 }
 0x42b   :  { %1029 = vmatpush3.bf16.msra.mxu0 %v1026_v15 }
 0x42c   :  { %1031 = vmatprep.subr.bf16.mxu0 %v1022_v6 }
 0x4f9   :  { %v940_v16 = vpop.f32.mrb[4].mxu0 }
 0x4fa   :  { %v490_v17 = vpop.f32.mrb[5].mxu0 }
 0x4fb   :  { %949 = vmatprep.mubr.msk.f32.mxu0 %vm44_vm0, %v490_v17 }
 0x4fc   :  { %950 = vmatmul.mubr.msk.f32.vlgmr.msra.gmra.mrb[6].mxu0 %vm44_vm0, %v940_v16 }
 0x4fd   :  { %1033 = vmatpush3.bf16.msra.mxu0 %v1022_v6 }
 0x4fe   :  { %1035 = vmatprep.subr.bf16.mxu0 %v1026_v15 }
 0x501   :  { %1037 = vmatpush3.bf16.msra.mxu0 %v1026_v15 }
 0x5cf   :  { %v951_v18 = vpop.f32.mrb[6].mxu0 }
 0x5d0   :  { %v601_v19 = vsub.f32 %v940_v16, %v951_v18  ;;  %v591_v20 = vpop.f32.mrb[7].mxu0 }
 0x5d1   :  { %v600_v21 = vsub.f32 %v490_v17, %v591_v20 }
 0x5d2   :  { %v603_v23 = vmul.f32 %v601_v19, %v601_v19 }
 0x5d3   :  { %v602_v22 = vmul.f32 %v600_v21, %v600_v21 }
 0x5d5   :  { %960 = vmatprep.mubr.msk.f32.mxu0 %vm44_vm0, %v602_v22 }
 0x5d6   :  { %961 = vmatmul.mubr.msk.f32.vlgmr.msra.gmra.mrb[8].mxu0 %vm44_vm0, %v603_v23 }
 0x6a9   :  { %v962_v24 = vpop.f32.mrb[8].mxu0 }
 0x6aa   :  { %v682_v25 = vadd.f32 1e-05, %v962_v24  ;;  %v676_v26 = vpop.f32.mrb[9].mxu0 }
 0x6ab   :  { %v677_v27 = vadd.f32 1e-05, %v676_v26 }
 0x6ac   :  { %1074 = vrsqrt.f32 %v682_v25 }
 0x6ad   :  { %1076 = vrsqrt.f32 %v677_v27 }
 0x6ae   :  { %1078 = vpow2.f32 %v858_v34 }
 0x6af   :  { %1080 = vpow2.f32 %v857_v35 }
 0x6b6   :  { %v1075_v30 = vpop.eup %1074 }
 0x6b7   :  { %v1077_v31 = vpop.eup %1076  ;;  %v688_v32 = vmul.f32 %v1075_v30, %v601_v19 }
 0x6b8   :  { %v687_v33 = vmul.f32 %v1077_v31, %v600_v21  ;;  %v1079_v36 = vpop.eup %1078 }
 0x6b9   :  { %707 = vrot.lane.b32.xlu1 %v688_v32, %s1143_s16  ;;  %v1081_v37 = vpop.eup %1080  ;;  %v696_v38 = vadd.f32 1.0, %v1079_v36 }
 0x6ba   :  { %705 = vrot.lane.b32.xlu0 %v687_v33, %s1143_s16  ;;  %v695_v39 = vadd.f32 1.0, %v1081_v37 }
 0x6bb   :  { %1082 = vrcp.f32 %v696_v38 }
 0x6bc   :  { %1084 = vrcp.f32 %v695_v39 }
 0x6c5   :  { %v1083_v41 = vpop.eup %1082 }
 0x6c6   :  { %v1085_v42 = vpop.eup %1084  ;;  %v702_v43 = vmul.f32 %v1083_v41, %v1215_v63 }
 0x6c7   :  { %v701_v45 = vmul.f32 %v1085_v42, %v1208_v53 }
 0x72b   :  { %v708_v44 = vpop.permute.xlu1 %707 }
 0x72c   :  { %v712_v46 = vmul.f32 %v708_v44, %v702_v43  ;;  %v706_v47 = vpop.permute.xlu0 %705 }
 0x72d   :  { %v711_v48 = vmul.f32 %v706_v47, %v701_v45 }
 0x72e   :  { %717 = vrot.lane.b32.xlu1 %v712_v46, %s1141_s0 }
 0x72f   :  { %715 = vrot.lane.b32.xlu0 %v711_v48, %s1141_s0 }
 0x7a0   :  { %v718_v49 = vpop.permute.xlu1 %717 }
 0x7a1   :  { %722 = vst.msk [vmem:[#allocation4 + $0x8] sm:$0xff] %vm44_vm0, %v718_v49  ;;  %v716_v50 = vpop.permute.xlu0 %715 }
 0x7a2   :  { %725 = vst.msk [vmem:[#allocation4 + $0x8] sm:$0xff] %vm723_vm14, %v702_v43 }
 0x7a3   :  { %721 = vst.msk [vmem:[#allocation4] sm:$0xff] %vm44_vm0, %v716_v50 }
 0x7a4   :  { %724 = vst.msk [vmem:[#allocation4] sm:$0xff] %vm723_vm14, %v701_v45 }
 0x7a9   :  { %v727_v53 = vld [vmem:[#allocation4 + $0x8] sm:$0xff] }
 0x7ab   :  { %v726_v63 = vld [vmem:[#allocation4] sm:$0xff] }
 0x7ac   :  { %971 = vmatprep.mubr.msk.f32.mxu1 %vm417_vm12, %v726_v63 }
 0x7ad   :  { %972 = vmatmul.mubr.msk.f32.vlgmr.msra.gmra.mrb[2].mxu1 %vm417_vm12, %v727_v53 }
 0x880   :  { %v973_v51 = vpop.f32.mrb[2].mxu1 }
 0x881   :  { %v826_v52 = vadd.f32 %v973_v51, %v1196_v1  ;;  %v816_v54 = vpop.f32.mrb[3].mxu1 }
 0x882   :  { %v825_v55 = vadd.f32 %v816_v54, %v1191_v0 }
 0x883   :  { %828 = vst.msk [vmem:[%s1327_s3 + $0x8] sm:$0xff] %vm44_vm0, %v826_v52 }
 0x884   :  { %827 = vst.msk [vmem:[%s1327_s3] sm:$0xff] %vm44_vm0, %v825_v55 }
 0x885   :  { %833 = vsyncpa [#allocation6], 1 }
 0x886   :  { %834 = vsyncpa [#allocation8], 1 }

</bundles_post_ra>
